<compile_context>
chip_gen: v7x
topology: tpu7x:2x2x1
jax: 0.10.0
libtpu: 0.0.40
codegen_flags: <defaults>
</compile_context>

<pallas_src>
import functools

import jax
import jax.numpy as jnp
from jax.experimental import pallas as pl
from jax.experimental.pallas import tpu as pltpu


def _noise_add_kernel(x_ref, n_ref, o_ref, *, sigma):
    # Pure elementwise VPU work: o = x + sigma * n, accumulated in f32
    # (keep f32 math: safe on v5e which has no bf16 VPU/EUP path).
    x = x_ref[...].astype(jnp.float32)
    noise = n_ref[...] * jnp.float32(sigma)
    o_ref[...] = (x + noise).astype(o_ref.dtype)


def _choose_layout(n):
    """Lane-dense (rows, lanes) factorization of n, avoiding padding when
    possible (NCHW activation sizes are almost always multiples of 128)."""
    for lanes in (8192, 4096, 2048, 1024, 512, 256, 128):
        if n % lanes == 0:
            return n // lanes, lanes, 0
    # Ragged fallback: pad up to a whole number of (8, 128) vregs.
    lanes = 128
    pad = (-n) % (8 * lanes)
    return (n + pad) // lanes, lanes, pad


def _choose_block_rows(rows, lanes):
    # Cap one f32 tile at ~2 MiB: 3 arrays x 2 buffers -> ~12 MiB of VMEM,
    # comfortably inside the scoped default on every generation (incl. v7x).
    max_tile_elems = 512 * 1024
    if rows <= 8:
        return rows
    br = min(rows, max(8, max_tile_elems // lanes))
    return max(8, (br // 8) * 8)


@functools.partial(jax.jit, static_argnames=("sigma",))
def _gaussian_noise_train(x, key, *, sigma):
    orig_shape = x.shape
    orig_dtype = x.dtype
    n = x.size

    rows, lanes, pad = _choose_layout(n)

    flat = x.reshape(-1)
    if pad:
        flat = jnp.pad(flat, (0, pad))
    x2d = flat.reshape(rows, lanes)

    # Standard-normal samples; scaled by sigma inside the kernel.
    noise2d = jax.random.normal(key, (rows, lanes), dtype=jnp.float32)

    block_rows = _choose_block_rows(rows, lanes)
    grid = (pl.cdiv(rows, block_rows),)
    spec = pl.BlockSpec((block_rows, lanes), lambda i: (i, 0))

    itemsize = jnp.dtype(orig_dtype).itemsize
    cost = pl.CostEstimate(
        flops=2 * rows * lanes,
        transcendentals=0,
        bytes_accessed=(2 * itemsize + 4) * rows * lanes,
    )

    out2d = pl.pallas_call(
        functools.partial(_noise_add_kernel, sigma=sigma),
        out_shape=jax.ShapeDtypeStruct((rows, lanes), orig_dtype),
        grid=grid,
        in_specs=[spec, spec],
        out_specs=spec,
        input_output_aliases={0: 0},  # write noise-added values in place of x2d
        compiler_params=pltpu.CompilerParams(
            dimension_semantics=("parallel",)),
        cost_estimate=cost,
    )(x2d, noise2d)

    out = out2d.reshape(-1)
    if pad:
        out = out[:n]
    return out.reshape(orig_shape)


def gaussian_noise(x, key=None, *, sigma=1.0, training=True):
    """JAX/Pallas equivalent of GaussianNoise.forward.

    A fresh `key` must be supplied per training step so the noise differs
    across forward passes (the old int-seed default made it deterministic).
    """
    if not training:
        return x
    if key is None:
        raise ValueError("gaussian_noise requires a PRNG key in training mode")
    return _gaussian_noise_train(x, key, sigma=float(sigma))


if __name__ == "__main__":
    root = jax.random.PRNGKey(0)
    kx, knoise = jax.random.split(root)

    # Small NCHW input consistent with a conv-style module: (N=2, C=4, H=16, W=16)
    x = jax.random.normal(kx, (2, 4, 16, 16), dtype=jnp.float32)

    sigma = 1.0
    y = gaussian_noise(x, knoise, sigma=sigma, training=True)
    y = jax.block_until_ready(y)

    # Shape/dtype preserved, noise actually added, roughly N(0, sigma^2).
    assert y.shape == x.shape and y.dtype == x.dtype
    noise = y - x
    assert float(jnp.max(jnp.abs(noise))) > 0.0
    assert abs(float(jnp.mean(noise))) < 0.2
    assert abs(float(jnp.std(noise)) - sigma) < 0.2

    # A different key must give different noise (no baked-in seed).
    y2 = jax.block_until_ready(
        gaussian_noise(x, jax.random.fold_in(knoise, 1), sigma=sigma, training=True))
    assert float(jnp.max(jnp.abs(y2 - y))) > 0.0

    # Eval mode is identity.
    y_eval = jax.block_until_ready(gaussian_noise(x, knoise, sigma=sigma, training=False))
    assert bool(jnp.all(y_eval == x))

    print("KERNEL_OK")
</pallas_src>

<mosaic_0001>
module attributes {stable_mosaic.version = 11 : i64} {
  func.func @_noise_add_kernel(%arg0: i32, %arg1: memref<1x2048xf32, #tpu.memory_space<vmem>>, %arg2: memref<1x2048xf32, #tpu.memory_space<vmem>>, %arg3: memref<1x2048xf32, #tpu.memory_space<vmem>>) attributes {dimension_semantics = [#tpu.dimension_semantics<parallel>], iteration_bounds = array<i64: 1>, scalar_prefetch = 0 : i64, scratch_operands = 0 : i64, tpu.core_type = #tpu.core_type<tc>, window_params = [{transform_indices = @transform_0, window_bounds = array<i64: 1, 2048>}, {transform_indices = @transform_1, window_bounds = array<i64: 1, 2048>}, {transform_indices = @transform_2, window_bounds = array<i64: 1, 2048>}]} {
    %c0 = arith.constant 0 : index
    %c0_0 = arith.constant 0 : index
    %0 = vector.load %arg1[%c0, %c0_0] : memref<1x2048xf32, #tpu.memory_space<vmem>>, vector<1x2048xf32>
    %c0_1 = arith.constant 0 : index
    %c0_2 = arith.constant 0 : index
    %1 = vector.load %arg2[%c0_1, %c0_2] : memref<1x2048xf32, #tpu.memory_space<vmem>>, vector<1x2048xf32>
    %cst = arith.constant 1.000000e+00 : f32
    %2 = vector.broadcast %cst : f32 to vector<1x2048xf32>
    %3 = arith.mulf %1, %2 : vector<1x2048xf32>
    %4 = arith.addf %0, %3 : vector<1x2048xf32>
    %c0_3 = arith.constant 0 : index
    %c0_4 = arith.constant 0 : index
    %5 = vector.load %arg3[%c0_3, %c0_4] : memref<1x2048xf32, #tpu.memory_space<vmem>>, vector<1x2048xf32>
    tpu.vector_store %arg3[%c0_3, %c0_4], %4 {strides = array<i32>} : memref<1x2048xf32, #tpu.memory_space<vmem>>, vector<1x2048xf32>,
    return
  }
  func.func @transform_0(%arg0: i32) -> (i32, i32) {
    %c0_i32 = arith.constant 0 : i32
    %c0_i32_0 = arith.constant 0 : i32
    return %arg0, %c0_i32 : i32, i32
  }
  func.func @transform_1(%arg0: i32) -> (i32, i32) {
    %c0_i32 = arith.constant 0 : i32
    %c0_i32_0 = arith.constant 0 : i32
    return %arg0, %c0_i32 : i32, i32
  }
  func.func @transform_2(%arg0: i32) -> (i32, i32) {
    %c0_i32 = arith.constant 0 : i32
    %c0_i32_0 = arith.constant 0 : i32
    return %arg0, %c0_i32 : i32, i32
  }
}

</mosaic_0001>

<bundles_post_ra>
// kernel: _gaussian_noise_train.1
= control target key start
LH: loop header
LB: loop body
LE: loop exit
PB: predicated region body
PF: predicated region fallthrough
CT: control target
= control target key end

     0   :  { %s56_s0 = inlined_call_operand.vmem [shape: f32[1,2048], index: 0, kind: input, shape index: {}, may-alias: {0,2}]   ;;  %s57_s1 = inlined_call_operand.vmem [shape: f32[1,2048], index: 1, kind: input, shape index: {}]   ;;  %s58_s2 = inlined_call_operand.vmem [shape: f32[1,2048], index: 2, kind: output, shape index: {}, may-alias: {0,2}]  }
   0x1   :  { %v11_v0 = vld [vmem:[%s56_s0] sm:$0xff]  ;;  %v12_v2 = vld [vmem:[%s56_s0 + $0x8] sm:$0xff] }
   0x2   :  { %v13_v1 = vld [vmem:[%s57_s1] sm:$0xff]  ;;  %v14_v4 = vld [vmem:[%s57_s1 + $0x8] sm:$0xff] }
   0x3   :  { %v15_v3 = vadd.f32 %v13_v1, %v11_v0  ;;  %v16_v5 = vadd.f32 %v14_v4, %v12_v2 }
   0x5   :  { %17 = vst [vmem:[%s58_s2] sm:$0xff] %v15_v3  ;;  %18 = vst [vmem:[%s58_s2 + $0x8] sm:$0xff] %v16_v5 }

</bundles_post_ra>
